<compile_context>
chip_gen: v6e
topology: v6e:2x2x1
jax: 0.10.0
libtpu: 0.0.40
codegen_flags: <defaults>
</compile_context>

<pallas_src>
import numpy as np
import jax
import jax.numpy as jnp
from jax import lax
from jax.experimental import pallas as pl
from jax.experimental.pallas import tpu as pltpu

# ----- config (mirrors base_config / rnn_config of the PyTorch TextRNN) -----
NUM_EMBEDDINGS = 50
EMBEDDING_DIM = 16
HIDDEN_SIZE = 32
SENTENCE_LENGTH = 8
BATCH = 2
NUM_CLASSES = 2

B_PAD = 8                       # pad batch rows to one full sublane group
V_PAD = 64                      # pad vocab rows of the packed gate table
H2 = 2 * HIDDEN_SIZE            # 64  : hidden layout [h_fwd | h_bwd]
G8H = 4 * H2                    # 256 : gate cols [i | f | o | g], each 2H wide
_TORCH_GATE_ORDER = (0, 1, 3, 2)   # torch row blocks [i,f,g,o] -> packed [i,f,o,g]


def _bilstm_head_kernel(ids_ref, gtab_ref, whh_ref, wlin_ref, blin_ref, out_ref):
    """Fused embedding-gather + input-projection + bi-LSTM recurrence + head.

    ids_ref  : (T*8, 1) int32  time-major token ids, batch padded to 8 sublanes
    gtab_ref : (V_PAD, 2*8H)   row v = [Emb[v]@Wih_f + b_f | Emb[v]@Wih_b + b_b],
                               gate cols within each 8H half: [i|f|o|g], 2H each
    whh_ref  : (2H, 8H)        block-diagonal over directions, same gate order
    wlin_ref : (2H, 2), blin_ref : (1, 2)
    out_ref  : (B, 2)
    """
    TB = ids_ref.shape[0]
    T = TB // B_PAD
    B = out_ref.shape[0]

    # (2) Embedding gather + hoisted input projection + bias, fused into ONE
    # one-hot MXU matmul against the pre-packed gate-embedding table.
    onehot = (ids_ref[...] ==
              lax.broadcasted_iota(jnp.int32, (TB, V_PAD), 1)).astype(jnp.float32)
    gates_x = jnp.dot(onehot, gtab_ref[...],
                      preferred_element_type=jnp.float32)          # (T*8, 2*8H)

    whh = whh_ref[...]                                             # (2H, 8H)
    h = jnp.zeros((B_PAD, H2), jnp.float32)                        # [h_fwd | h_bwd]
    c = jnp.zeros((B_PAD, H2), jnp.float32)

    # (3)+(5) Fused fwd+bwd recurrence, fully unrolled (T static).  Every row
    # slice starts on an 8-sublane boundary; the fwd/bwd combine does not
    # depend on h, so the scheduler hoists it off the serial MXU->EUP chain.
    for t in range(T):
        gx = (gates_x[t * B_PAD:(t + 1) * B_PAD, :G8H]             # fwd uses x[t]
              + gates_x[(T - 1 - t) * B_PAD:(T - t) * B_PAD, G8H:])  # bwd uses x[T-1-t]
        g_all = gx + jnp.dot(h, whh, preferred_element_type=jnp.float32)  # (8, 8H)
        # (4) one sigmoid slab over [i|f|o], one tanh over g
        ifo = jax.nn.sigmoid(g_all[:, :3 * H2])
        g = jnp.tanh(g_all[:, 3 * H2:])
        c = ifo[:, H2:2 * H2] * c + ifo[:, :H2] * g
        h = ifo[:, 2 * H2:3 * H2] * jnp.tanh(c)

    # h == concat(h_fwd_final, h_bwd_final) — exactly PyTorch's h_n concat.
    logits = (jnp.dot(h, wlin_ref[...], preferred_element_type=jnp.float32)
              + blin_ref[...])                                     # (8, 2)
    out_ref[...] = logits[:B, :]


def init_params(key):
    ks = jax.random.split(key, 12)
    s = 1.0 / np.sqrt(HIDDEN_SIZE)            # PyTorch LSTM default init bound
    sl = 1.0 / np.sqrt(2 * HIDDEN_SIZE)       # PyTorch Linear default init bound
    u = lambda k, shape, b: jax.random.uniform(k, shape, jnp.float32, -b, b)
    return {
        "embedding": jax.random.normal(ks[0], (NUM_EMBEDDINGS, EMBEDDING_DIM),
                                       jnp.float32),
        # forward direction (PyTorch shapes: (4H, E), (4H, H), (4H,), (4H,))
        "w_ih_f": u(ks[1], (4 * HIDDEN_SIZE, EMBEDDING_DIM), s),
        "w_hh_f": u(ks[2], (4 * HIDDEN_SIZE, HIDDEN_SIZE), s),
        "b_ih_f": u(ks[3], (4 * HIDDEN_SIZE,), s),
        "b_hh_f": u(ks[4], (4 * HIDDEN_SIZE,), s),
        # backward direction
        "w_ih_b": u(ks[5], (4 * HIDDEN_SIZE, EMBEDDING_DIM), s),
        "w_hh_b": u(ks[6], (4 * HIDDEN_SIZE, HIDDEN_SIZE), s),
        "b_ih_b": u(ks[7], (4 * HIDDEN_SIZE,), s),
        "b_hh_b": u(ks[8], (4 * HIDDEN_SIZE,), s),
        # linear head (2H -> 2)
        "w_lin": u(ks[9], (NUM_CLASSES, 2 * HIDDEN_SIZE), sl),
        "b_lin": u(ks[10], (NUM_CLASSES,), sl),
    }


def pack_params(params):
    """One-time weight packing (hoisted off the per-call path, per review #1).

    Builds:
      gtab (V_PAD, 2*8H): per-token gate pre-activations  Emb@W_ih + (b_ih+b_hh)
                          for both directions (embedding + input projection +
                          bias folded into one table).
      whh  (2H, 8H)     : recurrent weights, block-diagonal over directions,
                          gate column order [i|f|o|g], each gate 2H wide.
      wlin (2H, 2), blin (1, 2)
    """
    H = HIDDEN_SIZE
    hp = lax.Precision.HIGHEST

    emb_pad = jnp.zeros((V_PAD, EMBEDDING_DIM), jnp.float32)
    emb_pad = emb_pad.at[:NUM_EMBEDDINGS].set(params["embedding"].astype(jnp.float32))

    def gate(w, g):                       # torch (4H, K) -> (H, K) rows of gate g
        return w[g * H:(g + 1) * H, :]

    b_f = params["b_ih_f"] + params["b_hh_f"]
    b_b = params["b_ih_b"] + params["b_hh_b"]

    zVH = jnp.zeros((V_PAD, H), jnp.float32)
    zHH = jnp.zeros((H, H), jnp.float32)
    fwd_cols, bwd_cols, whh_cols = [], [], []
    for g in _TORCH_GATE_ORDER:
        xf = jnp.dot(emb_pad, gate(params["w_ih_f"], g).T,
                     precision=hp) + b_f[g * H:(g + 1) * H]          # (V_PAD, H)
        xb = jnp.dot(emb_pad, gate(params["w_ih_b"], g).T,
                     precision=hp) + b_b[g * H:(g + 1) * H]          # (V_PAD, H)
        fwd_cols.append(jnp.concatenate([xf, zVH], axis=1))          # fwd sub-cols
        bwd_cols.append(jnp.concatenate([zVH, xb], axis=1))          # bwd sub-cols
        whh_cols.append(jnp.concatenate(
            [jnp.concatenate([gate(params["w_hh_f"], g).T, zHH], axis=0),
             jnp.concatenate([zHH, gate(params["w_hh_b"], g).T], axis=0)],
            axis=1))                                                  # (2H, 2H)

    gtab = jnp.concatenate([jnp.concatenate(fwd_cols, axis=1),
                            jnp.concatenate(bwd_cols, axis=1)], axis=1)  # (V_PAD, 2*8H)
    whh = jnp.concatenate(whh_cols, axis=1)                              # (2H, 8H)
    return {
        "gtab": gtab,
        "whh": whh,
        "wlin": params["w_lin"].T.astype(jnp.float32),                   # (2H, 2)
        "blin": params["b_lin"].reshape(1, -1).astype(jnp.float32),      # (1, 2)
    }


@jax.jit
def text_rnn_forward(sentence, packed):
    B, T = sentence.shape
    # Minimal per-call prep: time-major ids, batch padded to 8 sublanes.
    # TODO(synk): for batches > 8, add a leading batch grid axis with
    # dimension_semantics=("parallel",) to use both TensorCores on v7x.
    ids = jnp.zeros((T, B_PAD), jnp.int32).at[:, :B].set(
        sentence.T.astype(jnp.int32)).reshape(T * B_PAD, 1)

    vmem = pl.BlockSpec(memory_space=pltpu.MemorySpace.VMEM)
    return pl.pallas_call(
        _bilstm_head_kernel,
        out_shape=jax.ShapeDtypeStruct((B, NUM_CLASSES), jnp.float32),
        in_specs=[vmem] * 5,
        out_specs=vmem,
    )(ids, packed["gtab"], packed["whh"], packed["wlin"], packed["blin"])


def reference_forward(sentence, params):
    """Pure-JAX reference mirroring torch.nn.LSTM (bidirectional) + Linear."""
    emb = jnp.take(params["embedding"], sentence, axis=0)  # (B, T, E)
    B = emb.shape[0]
    H = HIDDEN_SIZE
    hp = lax.Precision.HIGHEST

    def run(x_tbe, wih, whh, bih, bhh):
        h = jnp.zeros((B, H), jnp.float32)
        c = jnp.zeros((B, H), jnp.float32)
        for t in range(x_tbe.shape[0]):
            gates = (jnp.dot(x_tbe[t], wih.T, precision=hp) + bih
                     + jnp.dot(h, whh.T, precision=hp) + bhh)
            i = jax.nn.sigmoid(gates[:, 0:H])
            f = jax.nn.sigmoid(gates[:, H:2 * H])
            g = jnp.tanh(gates[:, 2 * H:3 * H])
            o = jax.nn.sigmoid(gates[:, 3 * H:4 * H])
            c = f * c + i * g
            h = o * jnp.tanh(c)
        return h

    x = jnp.transpose(emb, (1, 0, 2))
    h_f = run(x, params["w_ih_f"], params["w_hh_f"],
              params["b_ih_f"], params["b_hh_f"])
    h_b = run(x[::-1], params["w_ih_b"], params["w_hh_b"],
              params["b_ih_b"], params["b_hh_b"])
    h_cat = jnp.concatenate([h_f, h_b], axis=-1)
    return jnp.dot(h_cat, params["w_lin"].T, precision=hp) + params["b_lin"]


if __name__ == "__main__":
    key = jax.random.PRNGKey(0)
    pkey, skey = jax.random.split(key)
    params = init_params(pkey)
    packed = pack_params(params)                  # one-time, off the call path
    sentence = jax.random.randint(skey, (BATCH, SENTENCE_LENGTH), 0,
                                  NUM_EMBEDDINGS, dtype=jnp.int32)

    out = jax.block_until_ready(text_rnn_forward(sentence, packed))
    ref = jax.block_until_ready(reference_forward(sentence, params))

    assert out.shape == (BATCH, NUM_CLASSES)
    np.testing.assert_allclose(np.asarray(out), np.asarray(ref),
                               rtol=1e-4, atol=1e-4)

    print("KERNEL_OK")
</pallas_src>

<mosaic_0001>
module attributes {stable_mosaic.version = 11 : i64} {
  func.func @_bilstm_head_kernel(%arg0: memref<64x1xi32, #tpu.memory_space<vmem>>, %arg1: memref<64x512xf32, #tpu.memory_space<vmem>>, %arg2: memref<64x256xf32, #tpu.memory_space<vmem>>, %arg3: memref<64x2xf32, #tpu.memory_space<vmem>>, %arg4: memref<1x2xf32, #tpu.memory_space<vmem>>, %arg5: memref<2x2xf32, #tpu.memory_space<vmem>>) attributes {dimension_semantics = [], scalar_prefetch = 0 : i64, scratch_operands = 0 : i64, tpu.core_type = #tpu.core_type<tc>} {
    %c0 = arith.constant 0 : index
    %c0_0 = arith.constant 0 : index
    %0 = vector.load %arg0[%c0, %c0_0] : memref<64x1xi32, #tpu.memory_space<vmem>>, vector<64x1xi32>
    %1 = tpu.iota {dimensions = array<i32: 1>} : vector<64x64xi32>
    %2 = vector.broadcast %0 : vector<64x1xi32> to vector<64x64xi32>
    %3 = arith.cmpi eq, %2, %1 : vector<64x64xi32>
    %4 = arith.extui %3 : vector<64x64xi1> to vector<64x64xi32>
    %5 = arith.sitofp %4 : vector<64x64xi32> to vector<64x64xf32>
    %c0_1 = arith.constant 0 : index
    %c0_2 = arith.constant 0 : index
    %6 = vector.load %arg1[%c0_1, %c0_2] : memref<64x512xf32, #tpu.memory_space<vmem>>, vector<64x512xf32>
    %cst = arith.constant dense<0.000000e+00> : vector<64x512xf32>
    %7 = tpu.matmul %5, %6, %cst {dimension_numbers = #tpu.dot_dimension_numbers<[1], [0], [0], [1], [0, 0, 1, 1], [], []>} : vector<64x64xf32>, vector<64x512xf32>, vector<64x512xf32> -> vector<64x512xf32>
    %c0_3 = arith.constant 0 : index
    %c0_4 = arith.constant 0 : index
    %8 = vector.load %arg2[%c0_3, %c0_4] : memref<64x256xf32, #tpu.memory_space<vmem>>, vector<64x256xf32>
    %cst_5 = arith.constant 0.000000e+00 : f32
    %9 = vector.broadcast %cst_5 : f32 to vector<8x64xf32>
    %cst_6 = arith.constant 0.000000e+00 : f32
    %10 = vector.broadcast %cst_6 : f32 to vector<8x64xf32>
    %11 = vector.extract_strided_slice %7 {offsets = [0, 0], sizes = [8, 256], strides = [1, 1]} : vector<64x512xf32> to vector<8x256xf32>
    %12 = vector.extract_strided_slice %7 {offsets = [56, 256], sizes = [8, 256], strides = [1, 1]} : vector<64x512xf32> to vector<8x256xf32>
    %13 = arith.addf %11, %12 : vector<8x256xf32>
    %cst_7 = arith.constant dense<0.000000e+00> : vector<8x256xf32>
    %14 = tpu.matmul %9, %8, %cst_7 {dimension_numbers = #tpu.dot_dimension_numbers<[1], [0], [0], [1], [0, 0, 1, 1], [], []>} : vector<8x64xf32>, vector<64x256xf32>, vector<8x256xf32> -> vector<8x256xf32>
    %15 = arith.addf %13, %14 : vector<8x256xf32>
    %16 = vector.extract_strided_slice %15 {offsets = [0, 0], sizes = [8, 192], strides = [1, 1]} : vector<8x256xf32> to vector<8x192xf32>
    %17 = arith.negf %16 : vector<8x192xf32>
    %18 = math.exp %17 : vector<8x192xf32>
    %cst_8 = arith.constant 1.000000e+00 : f32
    %19 = vector.broadcast %cst_8 : f32 to vector<8x192xf32>
    %20 = arith.addf %19, %18 : vector<8x192xf32>
    %21 = arith.divf %19, %20 : vector<8x192xf32>
    %22 = vector.extract_strided_slice %15 {offsets = [0, 192], sizes = [8, 64], strides = [1, 1]} : vector<8x256xf32> to vector<8x64xf32>
    %23 = math.tanh %22 : vector<8x64xf32>
    %24 = vector.extract_strided_slice %21 {offsets = [0, 64], sizes = [8, 64], strides = [1, 1]} : vector<8x192xf32> to vector<8x64xf32>
    %25 = arith.mulf %24, %10 : vector<8x64xf32>
    %26 = vector.extract_strided_slice %21 {offsets = [0, 0], sizes = [8, 64], strides = [1, 1]} : vector<8x192xf32> to vector<8x64xf32>
    %27 = arith.mulf %26, %23 : vector<8x64xf32>
    %28 = arith.addf %25, %27 : vector<8x64xf32>
    %29 = vector.extract_strided_slice %21 {offsets = [0, 128], sizes = [8, 64], strides = [1, 1]} : vector<8x192xf32> to vector<8x64xf32>
    %30 = math.tanh %28 : vector<8x64xf32>
    %31 = arith.mulf %29, %30 : vector<8x64xf32>
    %32 = vector.extract_strided_slice %7 {offsets = [8, 0], sizes = [8, 256], strides = [1, 1]} : vector<64x512xf32> to vector<8x256xf32>
    %33 = vector.extract_strided_slice %7 {offsets = [48, 256], sizes = [8, 256], strides = [1, 1]} : vector<64x512xf32> to vector<8x256xf32>
    %34 = arith.addf %32, %33 : vector<8x256xf32>
    %cst_9 = arith.constant dense<0.000000e+00> : vector<8x256xf32>
    %35 = tpu.matmul %31, %8, %cst_9 {dimension_numbers = #tpu.dot_dimension_numbers<[1], [0], [0], [1], [0, 0, 1, 1], [], []>} : vector<8x64xf32>, vector<64x256xf32>, vector<8x256xf32> -> vector<8x256xf32>
    %36 = arith.addf %34, %35 : vector<8x256xf32>
    %37 = vector.extract_strided_slice %36 {offsets = [0, 0], sizes = [8, 192], strides = [1, 1]} : vector<8x256xf32> to vector<8x192xf32>
    %38 = arith.negf %37 : vector<8x192xf32>
    %39 = math.exp %38 : vector<8x192xf32>
    %cst_10 = arith.constant 1.000000e+00 : f32
    %40 = vector.broadcast %cst_10 : f32 to vector<8x192xf32>
    %41 = arith.addf %40, %39 : vector<8x192xf32>
    %42 = arith.divf %40, %41 : vector<8x192xf32>
    %43 = vector.extract_strided_slice %36 {offsets = [0, 192], sizes = [8, 64], strides = [1, 1]} : vector<8x256xf32> to vector<8x64xf32>
    %44 = math.tanh %43 : vector<8x64xf32>
    %45 = vector.extract_strided_slice %42 {offsets = [0, 64], sizes = [8, 64], strides = [1, 1]} : vector<8x192xf32> to vector<8x64xf32>
    %46 = arith.mulf %45, %28 : vector<8x64xf32>
    %47 = vector.extract_strided_slice %42 {offsets = [0, 0], sizes = [8, 64], strides = [1, 1]} : vector<8x192xf32> to vector<8x64xf32>
    %48 = arith.mulf %47, %44 : vector<8x64xf32>
    %49 = arith.addf %46, %48 : vector<8x64xf32>
    %50 = vector.extract_strided_slice %42 {offsets = [0, 128], sizes = [8, 64], strides = [1, 1]} : vector<8x192xf32> to vector<8x64xf32>
    %51 = math.tanh %49 : vector<8x64xf32>
    %52 = arith.mulf %50, %51 : vector<8x64xf32>
    %53 = vector.extract_strided_slice %7 {offsets = [16, 0], sizes = [8, 256], strides = [1, 1]} : vector<64x512xf32> to vector<8x256xf32>
    %54 = vector.extract_strided_slice %7 {offsets = [40, 256], sizes = [8, 256], strides = [1, 1]} : vector<64x512xf32> to vector<8x256xf32>
    %55 = arith.addf %53, %54 : vector<8x256xf32>
    %cst_11 = arith.constant dense<0.000000e+00> : vector<8x256xf32>
    %56 = tpu.matmul %52, %8, %cst_11 {dimension_numbers = #tpu.dot_dimension_numbers<[1], [0], [0], [1], [0, 0, 1, 1], [], []>} : vector<8x64xf32>, vector<64x256xf32>, vector<8x256xf32> -> vector<8x256xf32>
    %57 = arith.addf %55, %56 : vector<8x256xf32>
    %58 = vector.extract_strided_slice %57 {offsets = [0, 0], sizes = [8, 192], strides = [1, 1]} : vector<8x256xf32> to vector<8x192xf32>
    %59 = arith.negf %58 : vector<8x192xf32>
    %60 = math.exp %59 : vector<8x192xf32>
    %cst_12 = arith.constant 1.000000e+00 : f32
    %61 = vector.broadcast %cst_12 : f32 to vector<8x192xf32>
    %62 = arith.addf %61, %60 : vector<8x192xf32>
    %63 = arith.divf %61, %62 : vector<8x192xf32>
    %64 = vector.extract_strided_slice %57 {offsets = [0, 192], sizes = [8, 64], strides = [1, 1]} : vector<8x256xf32> to vector<8x64xf32>
    %65 = math.tanh %64 : vector<8x64xf32>
    %66 = vector.extract_strided_slice %63 {offsets = [0, 64], sizes = [8, 64], strides = [1, 1]} : vector<8x192xf32> to vector<8x64xf32>
    %67 = arith.mulf %66, %49 : vector<8x64xf32>
    %68 = vector.extract_strided_slice %63 {offsets = [0, 0], sizes = [8, 64], strides = [1, 1]} : vector<8x192xf32> to vector<8x64xf32>
    %69 = arith.mulf %68, %65 : vector<8x64xf32>
    %70 = arith.addf %67, %69 : vector<8x64xf32>
    %71 = vector.extract_strided_slice %63 {offsets = [0, 128], sizes = [8, 64], strides = [1, 1]} : vector<8x192xf32> to vector<8x64xf32>
    %72 = math.tanh %70 : vector<8x64xf32>
    %73 = arith.mulf %71, %72 : vector<8x64xf32>
    %74 = vector.extract_strided_slice %7 {offsets = [24, 0], sizes = [8, 256], strides = [1, 1]} : vector<64x512xf32> to vector<8x256xf32>
    %75 = vector.extract_strided_slice %7 {offsets = [32, 256], sizes = [8, 256], strides = [1, 1]} : vector<64x512xf32> to vector<8x256xf32>
    %76 = arith.addf %74, %75 : vector<8x256xf32>
    %cst_13 = arith.constant dense<0.000000e+00> : vector<8x256xf32>
    %77 = tpu.matmul %73, %8, %cst_13 {dimension_numbers = #tpu.dot_dimension_numbers<[1], [0], [0], [1], [0, 0, 1, 1], [], []>} : vector<8x64xf32>, vector<64x256xf32>, vector<8x256xf32> -> vector<8x256xf32>
    %78 = arith.addf %76, %77 : vector<8x256xf32>
    %79 = vector.extract_strided_slice %78 {offsets = [0, 0], sizes = [8, 192], strides = [1, 1]} : vector<8x256xf32> to vector<8x192xf32>
    %80 = arith.negf %79 : vector<8x192xf32>
    %81 = math.exp %80 : vector<8x192xf32>
    %cst_14 = arith.constant 1.000000e+00 : f32
    %82 = vector.broadcast %cst_14 : f32 to vector<8x192xf32>
    %83 = arith.addf %82, %81 : vector<8x192xf32>
    %84 = arith.divf %82, %83 : vector<8x192xf32>
    %85 = vector.extract_strided_slice %78 {offsets = [0, 192], sizes = [8, 64], strides = [1, 1]} : vector<8x256xf32> to vector<8x64xf32>
    %86 = math.tanh %85 : vector<8x64xf32>
    %87 = vector.extract_strided_slice %84 {offsets = [0, 64], sizes = [8, 64], strides = [1, 1]} : vector<8x192xf32> to vector<8x64xf32>
    %88 = arith.mulf %87, %70 : vector<8x64xf32>
    %89 = vector.extract_strided_slice %84 {offsets = [0, 0], sizes = [8, 64], strides = [1, 1]} : vector<8x192xf32> to vector<8x64xf32>
    %90 = arith.mulf %89, %86 : vector<8x64xf32>
    %91 = arith.addf %88, %90 : vector<8x64xf32>
    %92 = vector.extract_strided_slice %84 {offsets = [0, 128], sizes = [8, 64], strides = [1, 1]} : vector<8x192xf32> to vector<8x64xf32>
    %93 = math.tanh %91 : vector<8x64xf32>
    %94 = arith.mulf %92, %93 : vector<8x64xf32>
    %95 = vector.extract_strided_slice %7 {offsets = [32, 0], sizes = [8, 256], strides = [1, 1]} : vector<64x512xf32> to vector<8x256xf32>
    %96 = vector.extract_strided_slice %7 {offsets = [24, 256], sizes = [8, 256], strides = [1, 1]} : vector<64x512xf32> to vector<8x256xf32>
    %97 = arith.addf %95, %96 : vector<8x256xf32>
    %cst_15 = arith.constant dense<0.000000e+00> : vector<8x256xf32>
    %98 = tpu.matmul %94, %8, %cst_15 {dimension_numbers = #tpu.dot_dimension_numbers<[1], [0], [0], [1], [0, 0, 1, 1], [], []>} : vector<8x64xf32>, vector<64x256xf32>, vector<8x256xf32> -> vector<8x256xf32>
    %99 = arith.addf %97, %98 : vector<8x256xf32>
    %100 = vector.extract_strided_slice %99 {offsets = [0, 0], sizes = [8, 192], strides = [1, 1]} : vector<8x256xf32> to vector<8x192xf32>
    %101 = arith.negf %100 : vector<8x192xf32>
    %102 = math.exp %101 : vector<8x192xf32>
    %cst_16 = arith.constant 1.000000e+00 : f32
    %103 = vector.broadcast %cst_16 : f32 to vector<8x192xf32>
    %104 = arith.addf %103, %102 : vector<8x192xf32>
    %105 = arith.divf %103, %104 : vector<8x192xf32>
    %106 = vector.extract_strided_slice %99 {offsets = [0, 192], sizes = [8, 64], strides = [1, 1]} : vector<8x256xf32> to vector<8x64xf32>
    %107 = math.tanh %106 : vector<8x64xf32>
    %108 = vector.extract_strided_slice %105 {offsets = [0, 64], sizes = [8, 64], strides = [1, 1]} : vector<8x192xf32> to vector<8x64xf32>
    %109 = arith.mulf %108, %91 : vector<8x64xf32>
    %110 = vector.extract_strided_slice %105 {offsets = [0, 0], sizes = [8, 64], strides = [1, 1]} : vector<8x192xf32> to vector<8x64xf32>
    %111 = arith.mulf %110, %107 : vector<8x64xf32>
    %112 = arith.addf %109, %111 : vector<8x64xf32>
    %113 = vector.extract_strided_slice %105 {offsets = [0, 128], sizes = [8, 64], strides = [1, 1]} : vector<8x192xf32> to vector<8x64xf32>
    %114 = math.tanh %112 : vector<8x64xf32>
    %115 = arith.mulf %113, %114 : vector<8x64xf32>
    %116 = vector.extract_strided_slice %7 {offsets = [40, 0], sizes = [8, 256], strides = [1, 1]} : vector<64x512xf32> to vector<8x256xf32>
    %117 = vector.extract_strided_slice %7 {offsets = [16, 256], sizes = [8, 256], strides = [1, 1]} : vector<64x512xf32> to vector<8x256xf32>
    %118 = arith.addf %116, %117 : vector<8x256xf32>
    %cst_17 = arith.constant dense<0.000000e+00> : vector<8x256xf32>
    %119 = tpu.matmul %115, %8, %cst_17 {dimension_numbers = #tpu.dot_dimension_numbers<[1], [0], [0], [1], [0, 0, 1, 1], [], []>} : vector<8x64xf32>, vector<64x256xf32>, vector<8x256xf32> -> vector<8x256xf32>
    %120 = arith.addf %118, %119 : vector<8x256xf32>
    %121 = vector.extract_strided_slice %120 {offsets = [0, 0], sizes = [8, 192], strides = [1, 1]} : vector<8x256xf32> to vector<8x192xf32>
    %122 = arith.negf %121 : vector<8x192xf32>
    %123 = math.exp %122 : vector<8x192xf32>
    %cst_18 = arith.constant 1.000000e+00 : f32
    %124 = vector.broadcast %cst_18 : f32 to vector<8x192xf32>
    %125 = arith.addf %124, %123 : vector<8x192xf32>
    %126 = arith.divf %124, %125 : vector<8x192xf32>
    %127 = vector.extract_strided_slice %120 {offsets = [0, 192], sizes = [8, 64], strides = [1, 1]} : vector<8x256xf32> to vector<8x64xf32>
    %128 = math.tanh %127 : vector<8x64xf32>
    %129 = vector.extract_strided_slice %126 {offsets = [0, 64], sizes = [8, 64], strides = [1, 1]} : vector<8x192xf32> to vector<8x64xf32>
    %130 = arith.mulf %129, %112 : vector<8x64xf32>
    %131 = vector.extract_strided_slice %126 {offsets = [0, 0], sizes = [8, 64], strides = [1, 1]} : vector<8x192xf32> to vector<8x64xf32>
    %132 = arith.mulf %131, %128 : vector<8x64xf32>
    %133 = arith.addf %130, %132 : vector<8x64xf32>
    %134 = vector.extract_strided_slice %126 {offsets = [0, 128], sizes = [8, 64], strides = [1, 1]} : vector<8x192xf32> to vector<8x64xf32>
    %135 = math.tanh %133 : vector<8x64xf32>
    %136 = arith.mulf %134, %135 : vector<8x64xf32>
    %137 = vector.extract_strided_slice %7 {offsets = [48, 0], sizes = [8, 256], strides = [1, 1]} : vector<64x512xf32> to vector<8x256xf32>
    %138 = vector.extract_strided_slice %7 {offsets = [8, 256], sizes = [8, 256], strides = [1, 1]} : vector<64x512xf32> to vector<8x256xf32>
    %139 = arith.addf %137, %138 : vector<8x256xf32>
    %cst_19 = arith.constant dense<0.000000e+00> : vector<8x256xf32>
    %140 = tpu.matmul %136, %8, %cst_19 {dimension_numbers = #tpu.dot_dimension_numbers<[1], [0], [0], [1], [0, 0, 1, 1], [], []>} : vector<8x64xf32>, vector<64x256xf32>, vector<8x256xf32> -> vector<8x256xf32>
    %141 = arith.addf %139, %140 : vector<8x256xf32>
    %142 = vector.extract_strided_slice %141 {offsets = [0, 0], sizes = [8, 192], strides = [1, 1]} : vector<8x256xf32> to vector<8x192xf32>
    %143 = arith.negf %142 : vector<8x192xf32>
    %144 = math.exp %143 : vector<8x192xf32>
    %cst_20 = arith.constant 1.000000e+00 : f32
    %145 = vector.broadcast %cst_20 : f32 to vector<8x192xf32>
    %146 = arith.addf %145, %144 : vector<8x192xf32>
    %147 = arith.divf %145, %146 : vector<8x192xf32>
    %148 = vector.extract_strided_slice %141 {offsets = [0, 192], sizes = [8, 64], strides = [1, 1]} : vector<8x256xf32> to vector<8x64xf32>
    %149 = math.tanh %148 : vector<8x64xf32>
    %150 = vector.extract_strided_slice %147 {offsets = [0, 64], sizes = [8, 64], strides = [1, 1]} : vector<8x192xf32> to vector<8x64xf32>
    %151 = arith.mulf %150, %133 : vector<8x64xf32>
    %152 = vector.extract_strided_slice %147 {offsets = [0, 0], sizes = [8, 64], strides = [1, 1]} : vector<8x192xf32> to vector<8x64xf32>
    %153 = arith.mulf %152, %149 : vector<8x64xf32>
    %154 = arith.addf %151, %153 : vector<8x64xf32>
    %155 = vector.extract_strided_slice %147 {offsets = [0, 128], sizes = [8, 64], strides = [1, 1]} : vector<8x192xf32> to vector<8x64xf32>
    %156 = math.tanh %154 : vector<8x64xf32>
    %157 = arith.mulf %155, %156 : vector<8x64xf32>
    %158 = vector.extract_strided_slice %7 {offsets = [56, 0], sizes = [8, 256], strides = [1, 1]} : vector<64x512xf32> to vector<8x256xf32>
    %159 = vector.extract_strided_slice %7 {offsets = [0, 256], sizes = [8, 256], strides = [1, 1]} : vector<64x512xf32> to vector<8x256xf32>
    %160 = arith.addf %158, %159 : vector<8x256xf32>
    %cst_21 = arith.constant dense<0.000000e+00> : vector<8x256xf32>
    %161 = tpu.matmul %157, %8, %cst_21 {dimension_numbers = #tpu.dot_dimension_numbers<[1], [0], [0], [1], [0, 0, 1, 1], [], []>} : vector<8x64xf32>, vector<64x256xf32>, vector<8x256xf32> -> vector<8x256xf32>
    %162 = arith.addf %160, %161 : vector<8x256xf32>
    %163 = vector.extract_strided_slice %162 {offsets = [0, 0], sizes = [8, 192], strides = [1, 1]} : vector<8x256xf32> to vector<8x192xf32>
    %164 = arith.negf %163 : vector<8x192xf32>
    %165 = math.exp %164 : vector<8x192xf32>
    %cst_22 = arith.constant 1.000000e+00 : f32
    %166 = vector.broadcast %cst_22 : f32 to vector<8x192xf32>
    %167 = arith.addf %166, %165 : vector<8x192xf32>
    %168 = arith.divf %166, %167 : vector<8x192xf32>
    %169 = vector.extract_strided_slice %162 {offsets = [0, 192], sizes = [8, 64], strides = [1, 1]} : vector<8x256xf32> to vector<8x64xf32>
    %170 = math.tanh %169 : vector<8x64xf32>
    %171 = vector.extract_strided_slice %168 {offsets = [0, 64], sizes = [8, 64], strides = [1, 1]} : vector<8x192xf32> to vector<8x64xf32>
    %172 = arith.mulf %171, %154 : vector<8x64xf32>
    %173 = vector.extract_strided_slice %168 {offsets = [0, 0], sizes = [8, 64], strides = [1, 1]} : vector<8x192xf32> to vector<8x64xf32>
    %174 = arith.mulf %173, %170 : vector<8x64xf32>
    %175 = arith.addf %172, %174 : vector<8x64xf32>
    %176 = vector.extract_strided_slice %168 {offsets = [0, 128], sizes = [8, 64], strides = [1, 1]} : vector<8x192xf32> to vector<8x64xf32>
    %177 = math.tanh %175 : vector<8x64xf32>
    %178 = arith.mulf %176, %177 : vector<8x64xf32>
    %c0_23 = arith.constant 0 : index
    %c0_24 = arith.constant 0 : index
    %179 = vector.load %arg3[%c0_23, %c0_24] : memref<64x2xf32, #tpu.memory_space<vmem>>, vector<64x2xf32>
    %cst_25 = arith.constant dense<0.000000e+00> : vector<8x2xf32>
    %180 = tpu.matmul %178, %179, %cst_25 {dimension_numbers = #tpu.dot_dimension_numbers<[1], [0], [0], [1], [0, 0, 1, 1], [], []>} : vector<8x64xf32>, vector<64x2xf32>, vector<8x2xf32> -> vector<8x2xf32>
    %c0_26 = arith.constant 0 : index
    %c0_27 = arith.constant 0 : index
    %181 = vector.load %arg4[%c0_26, %c0_27] : memref<1x2xf32, #tpu.memory_space<vmem>>, vector<1x2xf32>
    %182 = vector.broadcast %181 : vector<1x2xf32> to vector<8x2xf32>
    %183 = arith.addf %180, %182 : vector<8x2xf32>
    %184 = vector.extract_strided_slice %183 {offsets = [0, 0], sizes = [2, 2], strides = [1, 1]} : vector<8x2xf32> to vector<2x2xf32>
    %c0_28 = arith.constant 0 : index
    %c0_29 = arith.constant 0 : index
    %185 = vector.load %arg5[%c0_28, %c0_29] : memref<2x2xf32, #tpu.memory_space<vmem>>, vector<2x2xf32>
    tpu.vector_store %arg5[%c0_28, %c0_29], %184 {strides = array<i32>} : memref<2x2xf32, #tpu.memory_space<vmem>>, vector<2x2xf32>,
    return
  }
}

</mosaic_0001>

<bundles_post_ra>
// kernel: text_rnn_forward.1
= control target key start
LH: loop header
LB: loop body
LE: loop exit
PB: predicated region body
PF: predicated region fallthrough
CT: control target
= control target key end

     0   :  { %10 = vsyncpa [#allocation3], 0  ;;  %s2030_s0 = inlined_call_operand.vmem [shape: s32[64,1], index: 0, kind: input, shape index: {}]   ;;  %s2031_s1 = inlined_call_operand.hbm [shape: f32[64,512], index: 1, kind: input, shape index: {}]   ;;  %s2032_s2 = inlined_call_operand.vmem [shape: f32[64,256], index: 2, kind: input, shape index: {}]   ;;  %s2033_s3 = inlined_call_operand.vmem [shape: f32[64,2], index: 3, kind: input, shape index: {}]   ;;  %s2034_s4 = inlined_call_operand.vmem [shape: f32[1,2], index: 4, kind: input, shape index: {}]   ;;  %s2035_s5 = inlined_call_operand.hbm [shape: f32[2,2], index: 5, kind: output, shape index: {}]  }
   0x1   :  { %11 = vsyncpa [#allocation4], 0  ;;  %s1588_s18 = smov [#allocation2]  }
   0x2   :  { %s19_s19 = sshll.u32 %s1588_s18, 4  ;;  %s20_s19 = int_to_ptr.vmem [resolvable:$true] %s19_s19 }
   0x3   :  { %s1552_s20 = scalar_lea.vmem %s20_s19, 4096  ;;  %p1557_p1 = scmp.lt.s32.totalorder %s20_s19, %s20_s19 }
   0x4   :  { %p1553_p0 = scmp.ne.s32.totalorder %s20_s19, %s1552_s20  ;;  %p1558_p2 = scmp.lt.s32.totalorder %s1552_s20, %s1552_s20 }
   0x6   :  { %p1559_p3 = por %p1558_p2, %p1557_p1 }
   0x8   :  { %p1560_p4 = pnand %p1559_p3, %p1553_p0 }
   0xa   :  { %1563 = shalt.err (!%p1560_p4)
}
   0xb   :  { %s1589_s21 = smov 512   ;;  %s1590_s22 = smov 32  }
   0xc   :  { %25 = dma.hbm_to_vmem [thread:$0]  %s2031_s1, 4096, %s20_s19, [#allocation3], %s1589_s21, %s1589_s21, %s1590_s22  }
   0xd   :  { %1584 = dma.done.wait [#allocation3], 4096  }
   0xe   :  { %1585 = vsyncadd [#allocation3], 4294963200  ;;  %v1591_v0 = vmov 0   ;;  %v1592_v1 = vmov 0.0   ;;  %v37_v2 = vld [vmem:[%s2030_s0 + $0x10] sm:$0xff]  ;;  %v35_v3 = vld [vmem:[%s2030_s0] sm:$0xff]  ;;  %v43_v43 = vlaneseq }
   0xf   :  { %1447 = vset.pattern.permute.xlu1 %v1591_v0  ;;  %1446 = vset.pattern.permute.xlu0 %v1591_v0  ;;  %v38_v4 = vld [vmem:[%s2030_s0 + $0x18] sm:$0xff]  ;;  %v36_v5 = vld [vmem:[%s2030_s0 + $0x8] sm:$0xff]  ;;  %v121_v7 = vld [vmem:[#allocation2 + $0xe0] sm:$0xff]  ;;  %vm125_vm0 = vcmask 523264   ;;  %vm1594_vm9 = vmmov 0   ;;  %vm1344_vm10 = vcmask 9216  }
  0x10   :  { %214 = vmatprep.mubr.f32.mxu0 %v1592_v1  ;;  %327 = vmatprep.mubr.f32.mxu1 %v1592_v1  ;;  %v122_v6 = vld [vmem:[#allocation2 + $0xe8] sm:$0xff]  ;;  %v124_v8 = vld [vmem:[#allocation2 + $0xf8] sm:$0xff]  ;;  %v123_v10 = vld [vmem:[#allocation2 + $0xf0] sm:$0xff]  ;;  %v1662_v44 = vand.u32 127, %v43_v43 }
  0x11   :  { %52 = vperm.xlu1 %1447, %v37_v2   ;;  %46 = vperm.xlu0 %1446, %v35_v3   ;;  %v118_v9 = vld [vmem:[#allocation2 + $0xc8] sm:$0xff]  ;;  %v117_v11 = vld [vmem:[#allocation2 + $0xc0] sm:$0xff]  ;;  %v120_v12 = vld [vmem:[#allocation2 + $0xd8] sm:$0xff] }
  0x12   :  { %166 = vmatprep.subr.mxu0 %v122_v6  ;;  %279 = vmatprep.subr.mxu1 %v124_v8  ;;  %v114_v13 = vld [vmem:[#allocation2 + $0xa8] sm:$0xff]  ;;  %v119_v14 = vld [vmem:[#allocation2 + $0xd0] sm:$0xff]  ;;  %v39_v16 = vld [vmem:[%s2030_s0 + $0x20] sm:$0xff] }
  0x13   :  { %167 = vmatpush1.msra.mxu0 %v121_v7  ;;  %v40_v15 = vld [vmem:[%s2030_s0 + $0x28] sm:$0xff]  ;;  %280 = vmatpush1.msra.mxu1 %v123_v10  ;;  %v113_v17 = vld [vmem:[#allocation2 + $0xa0] sm:$0xff]  ;;  %v116_v18 = vld [vmem:[#allocation2 + $0xb8] sm:$0xff] }
  0x14   :  { %168 = vmatprep.subr.mxu0 %v118_v9  ;;  %281 = vmatprep.subr.mxu1 %v120_v12  ;;  %v110_v19 = vld [vmem:[#allocation2 + $0x88] sm:$0xff]  ;;  %v115_v20 = vld [vmem:[#allocation2 + $0xb0] sm:$0xff]  ;;  %v109_v21 = vld [vmem:[#allocation2 + $0x80] sm:$0xff] }
  0x15   :  { %55 = vperm.xlu1 %1447, %v38_v4   ;;  %49 = vperm.xlu0 %1446, %v36_v5   ;;  %v112_v22 = vld [vmem:[#allocation2 + $0x98] sm:$0xff]  ;;  %v41_v24 = vld [vmem:[%s2030_s0 + $0x30] sm:$0xff]  ;;  %v106_v25 = vld [vmem:[#allocation2 + $0x68] sm:$0xff] }
  0x16   :  { %169 = vmatpush1.msra.mxu0 %v117_v11  ;;  %282 = vmatpush1.msra.mxu1 %v119_v14  ;;  %v42_v23 = vld [vmem:[%s2030_s0 + $0x38] sm:$0xff]  ;;  %v111_v26 = vld [vmem:[#allocation2 + $0x90] sm:$0xff]  ;;  %v105_v27 = vld [vmem:[#allocation2 + $0x60] sm:$0xff] }
  0x17   :  { %170 = vmatprep.subr.mxu0 %v114_v13  ;;  %283 = vmatprep.subr.mxu1 %v116_v18  ;;  %v108_v28 = vld [vmem:[#allocation2 + $0x78] sm:$0xff]  ;;  %v102_v29 = vld [vmem:[#allocation2 + $0x48] sm:$0xff]  ;;  %v107_v30 = vld [vmem:[#allocation2 + $0x70] sm:$0xff] }
  0x18   :  { %171 = vmatpush1.msra.mxu0 %v113_v17  ;;  %284 = vmatpush1.msra.mxu1 %v115_v20  ;;  %v101_v31 = vld [vmem:[#allocation2 + $0x40] sm:$0xff]  ;;  %v104_v32 = vld [vmem:[#allocation2 + $0x58] sm:$0xff]  ;;  %v98_v33 = vld [vmem:[#allocation2 + $0x28] sm:$0xff] }
  0x19   :  { %61 = vperm.xlu1 %1447, %v40_v15   ;;  %58 = vperm.xlu0 %1446, %v39_v16   ;;  %v103_v34 = vld [vmem:[#allocation2 + $0x50] sm:$0xff]  ;;  %v97_v35 = vld [vmem:[#allocation2 + $0x20] sm:$0xff]  ;;  %v100_v36 = vld [vmem:[#allocation2 + $0x38] sm:$0xff] }
  0x1a   :  { %172 = vmatprep.subr.mxu0 %v110_v19  ;;  %285 = vmatprep.subr.mxu1 %v112_v22  ;;  %v94_v37 = vld [vmem:[#allocation2 + $0x8] sm:$0xff]  ;;  %v99_v38 = vld [vmem:[#allocation2 + $0x30] sm:$0xff]  ;;  %v93_v39 = vld [vmem:[#allocation2] sm:$0xff] }
  0x1b   :  { %173 = vmatpush1.msra.mxu0 %v109_v21  ;;  %286 = vmatpush1.msra.mxu1 %v111_v26  ;;  %v96_v40 = vld [vmem:[#allocation2 + $0x18] sm:$0xff]  ;;  %v95_v41 = vld [vmem:[#allocation2 + $0x10] sm:$0xff]  ;;  %v1674_v48 = vld [vmem:[%s2032_s2 + $0x68] sm:$0xff] }
  0x1c   :  { %174 = vmatprep.subr.mxu0 %v106_v25  ;;  %287 = vmatprep.subr.mxu1 %v108_v28  ;;  %v1658_v42 = vld [vmem:[%s2032_s2 + $0x78] sm:$0xff]  ;;  %v1668_v46 = vld [vmem:[%s2032_s2 + $0x70] sm:$0xff]  ;;  %v1681_v49 = vld [vmem:[%s2032_s2 + $0x60] sm:$0xff] }
  0x1d   :  { %67 = vperm.xlu1 %1447, %v42_v23   ;;  %64 = vperm.xlu0 %1446, %v41_v24   ;;  %v1694_v53 = vld [vmem:[%s2032_s2 + $0x58] sm:$0xff]  ;;  %v1702_v54 = vld [vmem:[%s2032_s2 + $0x50] sm:$0xff]  ;;  %v1713_v57 = vld [vmem:[%s2032_s2 + $0x48] sm:$0xff] }
  0x1e   :  { %175 = vmatpush1.msra.mxu0 %v105_v27  ;;  %288 = vmatpush1.msra.mxu1 %v107_v30  ;;  %v1722_v58 = vld [vmem:[%s2032_s2 + $0x40] sm:$0xff]  ;;  %v1733_v61 = vld [vmem:[%s2032_s2 + $0x38] sm:$0xff]  ;;  %v1742_v62 = vld [vmem:[%s2032_s2 + $0x30] sm:$0xff] }
  0x1f   :  { %176 = vmatprep.subr.mxu0 %v102_v29  ;;  %289 = vmatprep.subr.mxu1 %v104_v32  ;;  %v1753_v2 = vld [vmem:[%s2032_s2 + $0x28] sm:$0xff]  ;;  %v1762_v3 = vld [vmem:[%s2032_s2 + $0x20] sm:$0xff]  ;;  %v1773_v6 = vld [vmem:[%s2032_s2 + $0x18] sm:$0xff] }
  0x20   :  { %177 = vmatpush1.msra.mxu0 %v101_v31  ;;  %290 = vmatpush1.msra.mxu1 %v103_v34  ;;  %v1782_v7 = vld [vmem:[%s2032_s2 + $0x10] sm:$0xff]  ;;  %v1793_v10 = vld [vmem:[%s2032_s2 + $0x8] sm:$0xff]  ;;  %v1802_v11 = vld [vmem:[%s2032_s2] sm:$0xff]  ;;  %s1593_s2 = smov 64  }
  0x21   :  { %178 = vmatprep.subr.mxu0 %v98_v33  ;;  %291 = vmatprep.subr.mxu1 %v100_v36 }
  0x22   :  { %179 = vmatpush1.msra.mxu0 %v97_v35  ;;  %292 = vmatpush1.msra.mxu1 %v99_v38 }
  0x23   :  { %180 = vmatprep.subr.mxu0 %v94_v37  ;;  %293 = vmatprep.subr.mxu1 %v96_v40 }
  0x24   :  { %181 = vmatpush1.msra.mxu0 %v93_v39  ;;  %294 = vmatpush1.msra.mxu1 %v95_v41 }
  0x25   :  { %413 = vmatprep.subr.mxu0 %v1658_v42  ;;  %521 = vmatprep.subr.mxu1 %v1658_v42 }
  0x8c   :  { %v47_v45 = vpop.permute.xlu0 %46  ;;  %v53_v50 = vpop.permute.xlu1 %52 }
  0x8d   :  { %vm69_vm1 = vcmp.eq.s32.totalorder %v47_v45, %v1662_v44  ;;  %vm71_vm2 = vcmp.eq.s32.totalorder %v53_v50, %v1662_v44 }
  0x8e   :  { %v1361_v47 = vsel %vm69_vm1, 1.0, %v1592_v1  ;;  %v1363_v55 = vsel %vm71_vm2, 1.0, %v1592_v1 }
  0x8f   :  { %1369 = vmatmul.mubr.msk.f32.vlgmr.msra.gmra.mxu0 %vm125_vm0, %v1361_v47  ;;  %1377 = vmatmul.mubr.msk.f32.vlgmr.msra.gmra.mxu1 %vm125_vm0, %v1361_v47 }
  0x90   :  { %414 = vmatpush1.msra.mxu0 %v1668_v46  ;;  %v50_v51 = vpop.permute.xlu0 %49  ;;  %220 = vmatprep.mubr.f32.mxu0 %v1592_v1  ;;  %v56_v56 = vpop.permute.xlu1 %55 }
  0x91   :  { %vm70_vm3 = vcmp.eq.s32.totalorder %v50_v51, %v1662_v44  ;;  %333 = vmatprep.mubr.f32.mxu1 %v1592_v1  ;;  %415 = vmatprep.subr.mxu0 %v1674_v48  ;;  %vm72_vm4 = vcmp.eq.s32.totalorder %v56_v56, %v1662_v44 }
  0x92   :  { %v1362_v52 = vsel %vm70_vm3, 1.0, %v1592_v1  ;;  %416 = vmatpush1.msra.mxu0 %v1681_v49  ;;  %522 = vmatpush1.msra.mxu1 %v1668_v46  ;;  %v1364_v60 = vsel %vm72_vm4, 1.0, %v1592_v1 }
  0x93   :  { %1370 = vmatmul.mubr.msk.f32.gmra.mxu0 %vm125_vm0, %v1362_v52  ;;  %1378 = vmatmul.mubr.msk.f32.gmra.mxu1 %vm125_vm0, %v1362_v52 }
  0x94   :  { %226 = vmatprep.mubr.f32.mxu0 %v1592_v1  ;;  %339 = vmatprep.mubr.f32.mxu1 %v1592_v1  ;;  %v59_v59 = vpop.permute.xlu0 %58  ;;  %v62_v63 = vpop.permute.xlu1 %61 }
  0x95   :  { %417 = vmatprep.subr.mxu0 %v1694_v53  ;;  %523 = vmatprep.subr.mxu1 %v1674_v48  ;;  %vm73_vm5 = vcmp.eq.s32.totalorder %v59_v59, %v1662_v44  ;;  %vm74_vm6 = vcmp.eq.s32.totalorder %v62_v63, %v1662_v44 }
  0x96   :  { %418 = vmatpush1.msra.mxu0 %v1702_v54  ;;  %524 = vmatpush1.msra.mxu1 %v1681_v49  ;;  %v1365_v0 = vsel %vm73_vm5, 1.0, %v1592_v1  ;;  %v1366_v5 = vsel %vm74_vm6, 1.0, %v1592_v1 }
  0x97   :  { %1371 = vmatmul.mubr.msk.f32.gmra.mxu0 %vm125_vm0, %v1363_v55  ;;  %1379 = vmatmul.mubr.msk.f32.gmra.mxu1 %vm125_vm0, %v1363_v55 }
  0x98   :  { %232 = vmatprep.mubr.f32.mxu0 %v1592_v1  ;;  %345 = vmatprep.mubr.f32.mxu1 %v1592_v1  ;;  %v65_v4 = vpop.permute.xlu0 %64  ;;  %v68_v8 = vpop.permute.xlu1 %67 }
  0x99   :  { %419 = vmatprep.subr.mxu0 %v1713_v57  ;;  %525 = vmatprep.subr.mxu1 %v1694_v53  ;;  %vm75_vm7 = vcmp.eq.s32.totalorder %v65_v4, %v1662_v44  ;;  %vm76_vm8 = vcmp.eq.s32.totalorder %v68_v8, %v1662_v44 }
  0x9a   :  { %420 = vmatpush1.msra.mxu0 %v1722_v58  ;;  %526 = vmatpush1.msra.mxu1 %v1702_v54  ;;  %v1367_v9 = vsel %vm75_vm7, 1.0, %v1592_v1  ;;  %v1368_v12 = vsel %vm76_vm8, 1.0, %v1592_v1 }
  0x9b   :  { %1372 = vmatmul.mubr.msk.f32.gmra.mxu0 %vm125_vm0, %v1364_v60  ;;  %1380 = vmatmul.mubr.msk.f32.gmra.mxu1 %vm125_vm0, %v1364_v60 }
  0x9c   :  { %238 = vmatprep.mubr.f32.mxu0 %v1592_v1  ;;  %351 = vmatprep.mubr.f32.mxu1 %v1592_v1 }
  0x9d   :  { %421 = vmatprep.subr.mxu0 %v1733_v61  ;;  %527 = vmatprep.subr.mxu1 %v1713_v57 }
  0x9e   :  { %422 = vmatpush1.msra.mxu0 %v1742_v62  ;;  %528 = vmatpush1.msra.mxu1 %v1722_v58 }
  0x9f   :  { %1373 = vmatmul.mubr.msk.f32.gmra.mxu0 %vm125_vm0, %v1365_v0  ;;  %1381 = vmatmul.mubr.msk.f32.gmra.mxu1 %vm125_vm0, %v1365_v0 }
  0xa0   :  { %244 = vmatprep.mubr.f32.mxu0 %v1592_v1  ;;  %357 = vmatprep.mubr.f32.mxu1 %v1592_v1 }
  0xa1   :  { %423 = vmatprep.subr.mxu0 %v1753_v2  ;;  %529 = vmatprep.subr.mxu1 %v1733_v61 }
  0xa2   :  { %424 = vmatpush1.msra.mxu0 %v1762_v3  ;;  %530 = vmatpush1.msra.mxu1 %v1742_v62 }
  0xa3   :  { %1374 = vmatmul.mubr.msk.f32.gmra.mxu0 %vm125_vm0, %v1366_v5  ;;  %1382 = vmatmul.mubr.msk.f32.gmra.mxu1 %vm125_vm0, %v1366_v5 }
  0xa4   :  { %250 = vmatprep.mubr.f32.mxu0 %v1592_v1  ;;  %363 = vmatprep.mubr.f32.mxu1 %v1592_v1 }
  0xa5   :  { %425 = vmatprep.subr.mxu0 %v1773_v6  ;;  %531 = vmatprep.subr.mxu1 %v1753_v2 }
  0xa6   :  { %426 = vmatpush1.msra.mxu0 %v1782_v7  ;;  %532 = vmatpush1.msra.mxu1 %v1762_v3 }
  0xa7   :  { %1375 = vmatmul.mubr.msk.f32.gmra.mxu0 %vm125_vm0, %v1367_v9  ;;  %1383 = vmatmul.mubr.msk.f32.gmra.mxu1 %vm125_vm0, %v1367_v9 }
  0xa8   :  { %256 = vmatprep.mubr.f32.mxu0 %v1592_v1  ;;  %369 = vmatprep.mubr.f32.mxu1 %v1592_v1 }
  0xa9   :  { %427 = vmatprep.subr.mxu0 %v1793_v10  ;;  %533 = vmatprep.subr.mxu1 %v1773_v6 }
  0xaa   :  { %428 = vmatpush1.msra.mxu0 %v1802_v11  ;;  %534 = vmatpush1.msra.mxu1 %v1782_v7 }
  0xab   :  { %1376 = vmatmul.mubr.msk.f32.gmra.mxu0 %vm125_vm0, %v1368_v12  ;;  %1384 = vmatmul.mubr.msk.f32.gmra.mxu1 %vm125_vm0, %v1368_v12 }
  0xac   :  { %461 = vmatprep.mubr.f32.mxu0 %v1592_v1  ;;  %535 = vmatprep.subr.mxu1 %v1793_v10 }
  0xad   :  { %536 = vmatpush1.msra.mxu1 %v1802_v11  ;;  %569 = vmatprep.mubr.f32.mxu1 %v1592_v1 }
  0xae   :  { %629 = vmatprep.subr.mxu0 %v1658_v42  ;;  %737 = vmatprep.subr.mxu1 %v1658_v42 }
  0xaf   :  { %462 = vmatmul.mubr.f32.vlgmr.msra.gmra.mxu0 %v1592_v1 }
  0xb0   :  { %630 = vmatpush1.msra.mxu0 %v1668_v46  ;;  %677 = vmatprep.mubr.f32.mxu0 %v1592_v1 }
  0xb1   :  { %631 = vmatprep.subr.mxu0 %v1674_v48 }
  0xb2   :  { %632 = vmatpush1.msra.mxu0 %v1681_v49 }
  0xb3   :  { %633 = vmatprep.subr.mxu0 %v1694_v53 }
  0xb4   :  { %634 = vmatpush1.msra.mxu0 %v1702_v54 }
  0xb5   :  { %635 = vmatprep.subr.mxu0 %v1713_v57 }
  0xb6   :  { %636 = vmatpush1.msra.mxu0 %v1722_v58 }
  0xb7   :  { %637 = vmatprep.subr.mxu0 %v1733_v61 }
  0xb8   :  { %638 = vmatpush1.msra.mxu0 %v1742_v62 }
  0xb9   :  { %639 = vmatprep.subr.mxu0 %v1753_v2 }
  0xba   :  { %640 = vmatpush1.msra.mxu0 %v1762_v3 }
  0xbb   :  { %641 = vmatprep.subr.mxu0 %v1773_v6 }
  0xbc   :  { %642 = vmatpush1.msra.mxu0 %v1782_v7 }
  0xbd   :  { %643 = vmatprep.subr.mxu0 %v1793_v10 }
  0xbe   :  { %644 = vmatpush1.msra.mxu0 %v1802_v11 }
  0xbf   :  { %845 = vmatprep.subr.mxu0 %v1658_v42 }
 0x14f   :  { %v216_v13 = vpop.f32.mrf.mxu0  ;;  %v329_v14 = vpop.f32.mrf.mxu1 }
 0x151   :  { %v218_v15 = vpop.f32.mrf.mxu0  ;;  %v331_v16 = vpop.f32.mrf.mxu1 }
 0x153   :  { %v222_v17 = vpop.f32.mrf.mxu0  ;;  %v335_v18 = vpop.f32.mrf.mxu1 }
 0x155   :  { %v224_v19 = vpop.f32.mrf.mxu0  ;;  %v337_v20 = vpop.f32.mrf.mxu1 }
 0x157   :  { %v228_v21 = vpop.f32.mrf.mxu0  ;;  %v341_v22 = vpop.f32.mrf.mxu1 }
 0x159   :  { %v230_v23 = vpop.f32.mrf.mxu0  ;;  %v343_v24 = vpop.f32.mrf.mxu1 }
 0x15b   :  { %v234_v25 = vpop.f32.mrf.mxu0  ;;  %v347_v26 = vpop.f32.mrf.mxu1 }
 0x15d   :  { %v236_v27 = vpop.f32.mrf.mxu0  ;;  %v349_v28 = vpop.f32.mrf.mxu1 }
 0x15f   :  { %v240_v29 = vpop.f32.mrf.mxu0  ;;  %v353_v30 = vpop.f32.mrf.mxu1 }
 0x160   :  { %v1837_v31 = vadd.f32 %v347_v26, %v240_v29  ;;  %v1839_v32 = vadd.f32 %v353_v30, %v234_v25 }
 0x161   :  { %v242_v33 = vpop.f32.mrf.mxu0  ;;  %v355_v34 = vpop.f32.mrf.mxu1 }
 0x162   :  { %v1841_v35 = vadd.f32 %v349_v28, %v242_v33  ;;  %v1843_v36 = vadd.f32 %v355_v34, %v236_v27 }
 0x163   :  { %v246_v37 = vpop.f32.mrf.mxu0  ;;  %v359_v38 = vpop.f32.mrf.mxu1 }
 0x164   :  { %v1845_v39 = vadd.f32 %v341_v22, %v246_v37  ;;  %v1847_v40 = vadd.f32 %v359_v38, %v228_v21 }
 0x165   :  { %v248_v41 = vpop.f32.mrf.mxu0  ;;  %v361_v43 = vpop.f32.mrf.mxu1 }
 0x166   :  { %v1849_v44 = vadd.f32 %v343_v24, %v248_v41  ;;  %v1851_v45 = vadd.f32 %v361_v43, %v230_v23 }
 0x167   :  { %v252_v47 = vpop.f32.mrf.mxu0  ;;  %v365_v50 = vpop.f32.mrf.mxu1 }
 0x168   :  { %v1853_v51 = vadd.f32 %v335_v18, %v252_v47  ;;  %v1855_v52 = vadd.f32 %v365_v50, %v222_v17 }
 0x169   :  { %v254_v55 = vpop.f32.mrf.mxu0  ;;  %v367_v56 = vpop.f32.mrf.mxu1 }
 0x16a   :  { %v1857_v59 = vadd.f32 %v337_v20, %v254_v55  ;;  %v501_v60 = vadd.f32 %v367_v56, %v224_v19 }
 0x16b   :  { %v258_v63 = vpop.f32.mrf.mxu0  ;;  %v371_v0 = vpop.f32.mrf.mxu1 }
 0x16c   :  { %v1859_v4 = vadd.f32 %v329_v14, %v258_v63  ;;  %v392_v5 = vadd.f32 %v371_v0, %v216_v13 }
 0x16d   :  { %v260_v8 = vpop.f32.mrf.mxu0  ;;  %v373_v9 = vpop.f32.mrf.mxu1 }
 0x16e   :  { %v1861_v12 = vadd.f32 %v331_v16, %v260_v8  ;;  %v393_v22 = vadd.f32 %v373_v9, %v218_v15 }
 0x16f   :  { %v463_v21 = vpop.f32.mrf.mxu0 }
 0x170   :  { %v468_v18 = vadd.f32 %v463_v21, %v392_v5 }
 0x171   :  { %v465_v23 = vpop.f32.mrf.mxu0 }
 0x172   :  { %v469_v17 = vadd.f32 %v465_v23, %v393_v22  ;;  %v1385_v19 = vmul.f32 -1.442695, %v468_v18 }
 0x174   :  { %1448 = vtanh.f32 %v469_v17  ;;  %v1386_v29 = vmul.f32 -1.442695, %v469_v17 }
 0x175   :  { %1450 = vpow2.f32 %v1385_v19 }
 0x181   :  { %v1449_v24 = vpop.eup %1448 }
 0x182   :  { %485 = vrot.lane.b32.xlu0 %v1449_v24, %s1593_s2  ;;  %v1451_v20 = vpop.eup %1450 }
 0x183   :  { %v476_v14 = vadd.f32 1.0, %v1451_v20 }
 0x185   :  { %1452 = vrcp.f32 %v476_v14 }
 0x192   :  { %v1453_v13 = vpop.eup %1452 }
 0x193   :  { %v483_v16 = vmul.f32 0.0, %v1453_v13 }
 0x1f4   :  { %v486_v25 = vpop.permute.xlu0 %485 }
 0x1f5   :  { %v488_v26 = vmul.f32 %v1453_v13, %v486_v25 }
 0x1f7   :  { %490 = vrot.lane.b32.xlu1 %v488_v26, %s1593_s2 }
 0x269   :  { %v491_v15 = vpop.permute.xlu1 %490 }
 0x26a   :  { %v493_v27 = vadd.f32 %v491_v15, %v483_v16 }
 0x26c   :  { %1454 = vtanh.f32 %v493_v27 }
 0x26d   :  { %1456 = vpow2.f32 %v1386_v29 }
 0x279   :  { %v1455_v28 = vpop.eup %1454 }
 0x27a   :  { %496 = vrot.lane.b32.xlu0 %v1455_v28, %s1593_s2  ;;  %v1457_v30 = vpop.eup %1456 }
 0x27b   :  { %v477_v33 = vadd.f32 1.0, %v1457_v30 }
 0x27d   :  { %1458 = vrcp.f32 %v477_v33 }
 0x28a   :  { %v1459_v34 = vpop.eup %1458 }
 0x2ec   :  { %v497_v37 = vpop.permute.xlu0 %496 }
 0x2ed   :  { %v499_v38 = vmul.f32 %v1459_v34, %v497_v37 }
 0x2ef   :  { %1387 = vmatmul.mubr.msk.f32.vlgmr.msra.gmra.mxu1 %vm125_vm0, %v499_v38 }
 0x2f0   :  { %738 = vmatpush1.msra.mxu1 %v1668_v46  ;;  %785 = vmatprep.mubr.f32.mxu1 %v1592_v1 }
 0x2f1   :  { %739 = vmatprep.subr.mxu1 %v1674_v48 }
 0x2f2   :  { %740 = vmatpush1.msra.mxu1 %v1681_v49 }
 0x2f3   :  { %741 = vmatprep.subr.mxu1 %v1694_v53 }
 0x2f4   :  { %742 = vmatpush1.msra.mxu1 %v1702_v54 }
 0x2f5   :  { %743 = vmatprep.subr.mxu1 %v1713_v57 }
 0x2f6   :  { %744 = vmatpush1.msra.mxu1 %v1722_v58 }
 0x2f7   :  { %745 = vmatprep.subr.mxu1 %v1733_v61 }
 0x2f8   :  { %746 = vmatpush1.msra.mxu1 %v1742_v62 }
 0x2f9   :  { %747 = vmatprep.subr.mxu1 %v1753_v2 }
 0x2fa   :  { %748 = vmatpush1.msra.mxu1 %v1762_v3 }
 0x2fb   :  { %749 = vmatprep.subr.mxu1 %v1773_v6 }
 0x2fc   :  { %750 = vmatpush1.msra.mxu1 %v1782_v7 }
 0x2fd   :  { %751 = vmatprep.subr.mxu1 %v1793_v10 }
 0x2fe   :  { %752 = vmatpush1.msra.mxu1 %v1802_v11 }
 0x2ff   :  { %953 = vmatprep.subr.mxu1 %v1658_v42 }
 0x3af   :  { %v571_v41 = vpop.f32.mrf.mxu1 }
 0x3b0   :  { %v576_v43 = vadd.f32 %v571_v41, %v1855_v52 }
 0x3b1   :  { %v573_v47 = vpop.f32.mrf.mxu1 }
 0x3b2   :  { %v577_v50 = vadd.f32 %v573_v47, %v501_v60  ;;  %v1388_v56 = vmul.f32 -1.442695, %v576_v43 }
 0x3b4   :  { %1460 = vtanh.f32 %v577_v50  ;;  %v1389_v60 = vmul.f32 -1.442695, %v577_v50 }
 0x3b5   :  { %1462 = vpow2.f32 %v1388_v56 }
 0x3c1   :  { %v1461_v55 = vpop.eup %1460 }
 0x3c2   :  { %593 = vrot.lane.b32.xlu1 %v1461_v55, %s1593_s2  ;;  %v1463_v63 = vpop.eup %1462 }
 0x3c3   :  { %v584_v0 = vadd.f32 1.0, %v1463_v63 }
 0x3c5   :  { %1464 = vrcp.f32 %v584_v0 }
 0x3d2   :  { %v1465_v5 = vpop.eup %1464 }
 0x3d3   :  { %v591_v21 = vmul.f32 %v1465_v5, %v493_v27 }
 0x434   :  { %v594_v8 = vpop.permute.xlu1 %593 }
 0x435   :  { %v596_v9 = vmul.f32 %v1465_v5, %v594_v8 }
 0x437   :  { %598 = vrot.lane.b32.xlu0 %v596_v9, %s1593_s2 }
 0x4a9   :  { %v599_v22 = vpop.permute.xlu0 %598 }
 0x4aa   :  { %v601_v18 = vadd.f32 %v599_v22, %v591_v21 }
 0x4ac   :  { %1466 = vtanh.f32 %v601_v18 }
 0x4ad   :  { %1468 = vpow2.f32 %v1389_v60 }
 0x4b9   :  { %v1467_v52 = vpop.eup %1466 }
 0x4ba   :  { %604 = vrot.lane.b32.xlu1 %v1467_v52, %s1593_s2  ;;  %v1469_v23 = vpop.eup %1468 }
 0x4bb   :  { %v585_v17 = vadd.f32 1.0, %v1469_v23 }
 0x4bd   :  { %1470 = vrcp.f32 %v585_v17 }
 0x4ca   :  { %v1471_v24 = vpop.eup %1470 }
 0x52c   :  { %v605_v19 = vpop.permute.xlu1 %604 }
 0x52d   :  { %v607_v20 = vmul.f32 %v1471_v24, %v605_v19 }
 0x52f   :  { %1390 = vmatmul.mubr.msk.f32.vlgmr.msra.gmra.mxu0 %vm125_vm0, %v607_v20 }
 0x530   :  { %846 = vmatpush1.msra.mxu0 %v1668_v46  ;;  %893 = vmatprep.mubr.f32.mxu0 %v1592_v1 }
 0x531   :  { %847 = vmatprep.subr.mxu0 %v1674_v48 }
 0x532   :  { %848 = vmatpush1.msra.mxu0 %v1681_v49 }
 0x533   :  { %849 = vmatprep.subr.mxu0 %v1694_v53 }
 0x534   :  { %850 = vmatpush1.msra.mxu0 %v1702_v54 }
 0x535   :  { %851 = vmatprep.subr.mxu0 %v1713_v57 }
 0x536   :  { %852 = vmatpush1.msra.mxu0 %v1722_v58 }
 0x537   :  { %853 = vmatprep.subr.mxu0 %v1733_v61 }
 0x538   :  { %854 = vmatpush1.msra.mxu0 %v1742_v62 }
 0x539   :  { %855 = vmatprep.subr.mxu0 %v1753_v2 }
 0x53a   :  { %856 = vmatpush1.msra.mxu0 %v1762_v3 }
 0x53b   :  { %857 = vmatprep.subr.mxu0 %v1773_v6 }
 0x53c   :  { %858 = vmatpush1.msra.mxu0 %v1782_v7 }
 0x53d   :  { %859 = vmatprep.subr.mxu0 %v1793_v10 }
 0x53e   :  { %860 = vmatpush1.msra.mxu0 %v1802_v11 }
 0x53f   :  { %1061 = vmatprep.subr.mxu0 %v1658_v42 }
 0x5ef   :  { %v679_v14 = vpop.f32.mrf.mxu0 }
 0x5f0   :  { %v684_v13 = vadd.f32 %v679_v14, %v1847_v40 }
 0x5f1   :  { %v681_v25 = vpop.f32.mrf.mxu0 }
 0x5f2   :  { %v685_v26 = vadd.f32 %v681_v25, %v1851_v45  ;;  %v1391_v15 = vmul.f32 -1.442695, %v684_v13 }
 0x5f4   :  { %1472 = vtanh.f32 %v685_v26  ;;  %v1392_v45 = vmul.f32 -1.442695, %v685_v26 }
 0x5f5   :  { %1474 = vpow2.f32 %v1391_v15 }
 0x601   :  { %v1473_v16 = vpop.eup %1472 }
 0x602   :  { %701 = vrot.lane.b32.xlu0 %v1473_v16, %s1593_s2  ;;  %v1475_v27 = vpop.eup %1474 }
 0x603   :  { %v692_v28 = vadd.f32 1.0, %v1475_v27 }
 0x605   :  { %1476 = vrcp.f32 %v692_v28 }
 0x612   :  { %v1477_v29 = vpop.eup %1476 }
 0x613   :  { %v699_v34 = vmul.f32 %v1477_v29, %v601_v18 }
 0x674   :  { %v702_v30 = vpop.permute.xlu0 %701 }
 0x675   :  { %v704_v33 = vmul.f32 %v1477_v29, %v702_v30 }
 0x677   :  { %706 = vrot.lane.b32.xlu1 %v704_v33, %s1593_s2 }
 0x6e9   :  { %v707_v37 = vpop.permute.xlu1 %706 }
 0x6ea   :  { %v709_v40 = vadd.f32 %v707_v37, %v699_v34 }
 0x6ec   :  { %1478 = vtanh.f32 %v709_v40 }
 0x6ed   :  { %1480 = vpow2.f32 %v1392_v45 }
 0x6f9   :  { %v1479_v38 = vpop.eup %1478 }
 0x6fa   :  { %712 = vrot.lane.b32.xlu0 %v1479_v38, %s1593_s2  ;;  %v1481_v41 = vpop.eup %1480 }
 0x6fb   :  { %v693_v43 = vadd.f32 1.0, %v1481_v41 }
 0x6fd   :  { %1482 = vrcp.f32 %v693_v43 }
 0x70a   :  { %v1483_v47 = vpop.eup %1482 }
 0x76c   :  { %v713_v50 = vpop.permute.xlu0 %712 }
 0x76d   :  { %v715_v55 = vmul.f32 %v1483_v47, %v713_v50 }
 0x76f   :  { %1393 = vmatmul.mubr.msk.f32.vlgmr.msra.gmra.mxu1 %vm125_vm0, %v715_v55 }
 0x770   :  { %954 = vmatpush1.msra.mxu1 %v1668_v46  ;;  %1001 = vmatprep.mubr.f32.mxu1 %v1592_v1 }
 0x771   :  { %955 = vmatprep.subr.mxu1 %v1674_v48 }
 0x772   :  { %956 = vmatpush1.msra.mxu1 %v1681_v49 }
 0x773   :  { %957 = vmatprep.subr.mxu1 %v1694_v53 }
 0x774   :  { %958 = vmatpush1.msra.mxu1 %v1702_v54 }
 0x775   :  { %959 = vmatprep.subr.mxu1 %v1713_v57 }
 0x776   :  { %960 = vmatpush1.msra.mxu1 %v1722_v58 }
 0x777   :  { %961 = vmatprep.subr.mxu1 %v1733_v61 }
 0x778   :  { %962 = vmatpush1.msra.mxu1 %v1742_v62 }
 0x779   :  { %963 = vmatprep.subr.mxu1 %v1753_v2 }
 0x77a   :  { %964 = vmatpush1.msra.mxu1 %v1762_v3 }
 0x77b   :  { %965 = vmatprep.subr.mxu1 %v1773_v6 }
 0x77c   :  { %966 = vmatpush1.msra.mxu1 %v1782_v7 }
 0x77d   :  { %967 = vmatprep.subr.mxu1 %v1793_v10 }
 0x77e   :  { %968 = vmatpush1.msra.mxu1 %v1802_v11 }
 0x77f   :  { %1169 = vmatprep.subr.mxu1 %v1658_v42 }
 0x82f   :  { %v787_v56 = vpop.f32.mrf.mxu1 }
 0x830   :  { %v792_v63 = vadd.f32 %v787_v56, %v1839_v32 }
 0x831   :  { %v789_v0 = vpop.f32.mrf.mxu1 }
 0x832   :  { %v793_v5 = vadd.f32 %v789_v0, %v1843_v36  ;;  %v1394_v9 = vmul.f32 -1.442695, %v792_v63 }
 0x834   :  { %1484 = vtanh.f32 %v793_v5  ;;  %v1395_v36 = vmul.f32 -1.442695, %v793_v5 }
 0x835   :  { %1486 = vpow2.f32 %v1394_v9 }
 0x841   :  { %v1485_v8 = vpop.eup %1484 }
 0x842   :  { %809 = vrot.lane.b32.xlu1 %v1485_v8, %s1593_s2  ;;  %v1487_v21 = vpop.eup %1486 }
 0x843   :  { %v800_v22 = vadd.f32 1.0, %v1487_v21 }
 0x845   :  { %1488 = vrcp.f32 %v800_v22 }
 0x852   :  { %v1489_v18 = vpop.eup %1488 }
 0x853   :  { %v807_v42 = vmul.f32 %v1489_v18, %v709_v40 }
 0x8b4   :  { %v810_v52 = vpop.permute.xlu1 %809 }
 0x8b5   :  { %v812_v60 = vmul.f32 %v1489_v18, %v810_v52 }
 0x8b7   :  { %814 = vrot.lane.b32.xlu0 %v812_v60, %s1593_s2 }
 0x929   :  { %v815_v23 = vpop.permute.xlu0 %814 }
 0x92a   :  { %v817_v32 = vadd.f32 %v815_v23, %v807_v42 }
 0x92c   :  { %1490 = vtanh.f32 %v817_v32 }
 0x92d   :  { %1492 = vpow2.f32 %v1395_v36 }
 0x939   :  { %v1491_v17 = vpop.eup %1490 }
 0x93a   :  { %820 = vrot.lane.b32.xlu1 %v1491_v17, %s1593_s2  ;;  %v1493_v24 = vpop.eup %1492 }
 0x93b   :  { %v801_v19 = vadd.f32 1.0, %v1493_v24 }
 0x93d   :  { %1494 = vrcp.f32 %v801_v19 }
 0x94a   :  { %v1495_v20 = vpop.eup %1494 }
 0x9ac   :  { %v821_v14 = vpop.permute.xlu1 %820 }
 0x9ad   :  { %v823_v13 = vmul.f32 %v1495_v20, %v821_v14 }
 0x9af   :  { %1396 = vmatmul.mubr.msk.f32.vlgmr.msra.gmra.mxu0 %vm125_vm0, %v823_v13 }
 0x9b0   :  { %1062 = vmatpush1.msra.mxu0 %v1668_v46  ;;  %1109 = vmatprep.mubr.f32.mxu0 %v1592_v1 }
 0x9b1   :  { %1063 = vmatprep.subr.mxu0 %v1674_v48 }
 0x9b2   :  { %1064 = vmatpush1.msra.mxu0 %v1681_v49 }
 0x9b3   :  { %1065 = vmatprep.subr.mxu0 %v1694_v53 }
 0x9b4   :  { %1066 = vmatpush1.msra.mxu0 %v1702_v54 }
 0x9b5   :  { %1067 = vmatprep.subr.mxu0 %v1713_v57 }
 0x9b6   :  { %1068 = vmatpush1.msra.mxu0 %v1722_v58 }
 0x9b7   :  { %1069 = vmatprep.subr.mxu0 %v1733_v61 }
 0x9b8   :  { %1070 = vmatpush1.msra.mxu0 %v1742_v62 }
 0x9b9   :  { %1071 = vmatprep.subr.mxu0 %v1753_v2 }
 0x9ba   :  { %1072 = vmatpush1.msra.mxu0 %v1762_v3 }
 0x9bb   :  { %1073 = vmatprep.subr.mxu0 %v1773_v6 }
 0x9bc   :  { %1074 = vmatpush1.msra.mxu0 %v1782_v7 }
 0x9bd   :  { %1075 = vmatprep.subr.mxu0 %v1793_v10 }
 0x9be   :  { %1076 = vmatpush1.msra.mxu0 %v1802_v11 }
 0x9bf   :  { %1419 = vmatprep.subr.mxu0 %v1592_v1 }
 0xa6f   :  { %v895_v25 = vpop.f32.mrf.mxu0 }
 0xa70   :  { %v900_v26 = vadd.f32 %v895_v25, %v1837_v31 }
 0xa71   :  { %v897_v16 = vpop.f32.mrf.mxu0 }
 0xa72   :  { %v901_v15 = vadd.f32 %v897_v16, %v1841_v35  ;;  %v1397_v28 = vmul.f32 -1.442695, %v900_v26 }
 0xa74   :  { %1496 = vtanh.f32 %v901_v15  ;;  %v1398_v35 = vmul.f32 -1.442695, %v901_v15 }
 0xa75   :  { %1498 = vpow2.f32 %v1397_v28 }
 0xa81   :  { %v1497_v27 = vpop.eup %1496 }
 0xa82   :  { %917 = vrot.lane.b32.xlu0 %v1497_v27, %s1593_s2  ;;  %v1499_v29 = vpop.eup %1498 }
 0xa83   :  { %v908_v30 = vadd.f32 1.0, %v1499_v29 }
 0xa85   :  { %1500 = vrcp.f32 %v908_v30 }
 0xa92   :  { %v1501_v33 = vpop.eup %1500 }
 0xa93   :  { %v915_v40 = vmul.f32 %v1501_v33, %v817_v32 }
 0xaf4   :  { %v918_v34 = vpop.permute.xlu0 %917 }
 0xaf5   :  { %v920_v37 = vmul.f32 %v1501_v33, %v918_v34 }
 0xaf7   :  { %922 = vrot.lane.b32.xlu1 %v920_v37, %s1593_s2 }
 0xb69   :  { %v923_v38 = vpop.permute.xlu1 %922 }
 0xb6a   :  { %v925_v31 = vadd.f32 %v923_v38, %v915_v40 }
 0xb6c   :  { %1502 = vtanh.f32 %v925_v31 }
 0xb6d   :  { %1504 = vpow2.f32 %v1398_v35  ;;  %v1259_v35 = vld [vmem:[%s2033_s3 + $0x18] sm:$0xff] }
 0xb79   :  { %v1503_v45 = vpop.eup %1502 }
 0xb7a   :  { %928 = vrot.lane.b32.xlu0 %v1503_v45, %s1593_s2  ;;  %v1505_v41 = vpop.eup %1504  ;;  %v1260_v45 = vld [vmem:[%s2033_s3 + $0x20] sm:$0xff] }
 0xb7b   :  { %v909_v43 = vadd.f32 1.0, %v1505_v41  ;;  %v1258_v41 = vld [vmem:[%s2033_s3 + $0x10] sm:$0xff] }
 0xb7d   :  { %1506 = vrcp.f32 %v909_v43  ;;  %v1257_v43 = vld [vmem:[%s2033_s3 + $0x8] sm:$0xff] }
 0xb8a   :  { %v1507_v47 = vpop.eup %1506 }
 0xbec   :  { %v929_v50 = vpop.permute.xlu0 %928 }
 0xbed   :  { %v931_v55 = vmul.f32 %v1507_v47, %v929_v50 }
 0xbef   :  { %1399 = vmatmul.mubr.msk.f32.vlgmr.msra.gmra.mxu1 %vm125_vm0, %v931_v55 }
 0xbf0   :  { %1170 = vmatpush1.msra.mxu1 %v1668_v46  ;;  %1217 = vmatprep.mubr.f32.mxu1 %v1592_v1 }
 0xbf1   :  { %1171 = vmatprep.subr.mxu1 %v1674_v48 }
 0xbf2   :  { %1172 = vmatpush1.msra.mxu1 %v1681_v49 }
 0xbf3   :  { %1173 = vmatprep.subr.mxu1 %v1694_v53 }
 0xbf4   :  { %1174 = vmatpush1.msra.mxu1 %v1702_v54 }
 0xbf5   :  { %1175 = vmatprep.subr.mxu1 %v1713_v57 }
 0xbf6   :  { %1176 = vmatpush1.msra.mxu1 %v1722_v58 }
 0xbf7   :  { %1177 = vmatprep.subr.mxu1 %v1733_v61 }
 0xbf8   :  { %1178 = vmatpush1.msra.mxu1 %v1742_v62 }
 0xbf9   :  { %1179 = vmatprep.subr.mxu1 %v1753_v2 }
 0xbfa   :  { %1180 = vmatpush1.msra.mxu1 %v1762_v3 }
 0xbfb   :  { %1181 = vmatprep.subr.mxu1 %v1773_v6 }
 0xbfc   :  { %1182 = vmatpush1.msra.mxu1 %v1782_v7 }
 0xbfd   :  { %1183 = vmatprep.subr.mxu1 %v1793_v10 }
 0xbfe   :  { %1184 = vmatpush1.msra.mxu1 %v1802_v11 }
 0xcaf   :  { %v1003_v46 = vpop.f32.mrf.mxu1 }
 0xcb0   :  { %v1008_v48 = vadd.f32 %v1003_v46, %v1845_v39  ;;  %v1256_v46 = vld [vmem:[%s2033_s3] sm:$0xff] }
 0xcb1   :  { %v1005_v49 = vpop.f32.mrf.mxu1 }
 0xcb2   :  { %v1009_v53 = vadd.f32 %v1005_v49, %v1849_v44  ;;  %v1400_v57 = vmul.f32 -1.442695, %v1008_v48 }
 0xcb4   :  { %1508 = vtanh.f32 %v1009_v53  ;;  %v1401_v39 = vmul.f32 -1.442695, %v1009_v53 }
 0xcb5   :  { %1510 = vpow2.f32 %v1400_v57 }
 0xcc1   :  { %v1509_v54 = vpop.eup %1508 }
 0xcc2   :  { %1025 = vrot.lane.b32.xlu1 %v1509_v54, %s1593_s2  ;;  %v1511_v58 = vpop.eup %1510 }
 0xcc3   :  { %v1016_v61 = vadd.f32 1.0, %v1511_v58 }
 0xcc5   :  { %1512 = vrcp.f32 %v1016_v61 }
 0xcd2   :  { %v1513_v62 = vpop.eup %1512 }
 0xcd3   :  { %v1023_v6 = vmul.f32 %v1513_v62, %v925_v31  ;;  %v1261_v31 = vld [vmem:[%s2033_s3 + $0x28] sm:$0xff] }
 0xd34   :  { %v1026_v2 = vpop.permute.xlu1 %1025 }
 0xd35   :  { %v1028_v3 = vmul.f32 %v1513_v62, %v1026_v2  ;;  %v1408_v62 = vld [vmem:[%s2034_s4] ss:$0 sm:$0xff] }
 0xd37   :  { %1030 = vrot.lane.b32.xlu0 %v1028_v3, %s1593_s2 }
 0xda9   :  { %v1031_v7 = vpop.permute.xlu0 %1030 }
 0xdaa   :  { %v1033_v10 = vadd.f32 %v1031_v7, %v1023_v6 }
 0xdac   :  { %1514 = vtanh.f32 %v1033_v10 }
 0xdad   :  { %1516 = vpow2.f32 %v1401_v39 }
 0xdb9   :  { %v1515_v11 = vpop.eup %1514 }
 0xdba   :  { %1036 = vrot.lane.b32.xlu1 %v1515_v11, %s1593_s2  ;;  %v1517_v44 = vpop.eup %1516 }
 0xdbb   :  { %v1017_v56 = vadd.f32 1.0, %v1517_v44 }
 0xdbd   :  { %1518 = vrcp.f32 %v1017_v56 }
 0xdca   :  { %v1519_v63 = vpop.eup %1518 }
 0xe2c   :  { %v1037_v0 = vpop.permute.xlu1 %1036 }
 0xe2d   :  { %v1039_v5 = vmul.f32 %v1519_v63, %v1037_v0 }
 0xe2f   :  { %1402 = vmatmul.mubr.msk.f32.vlgmr.msra.gmra.mxu0 %vm125_vm0, %v1039_v5 }
 0xe30   :  { %1435 = vmatprep.mubr.msk.f32.mxu0 %vm1594_vm9, %v1592_v1 }
 0xeef   :  { %v1111_v8 = vpop.f32.mrf.mxu0 }
 0xef0   :  { %v1116_v9 = vadd.f32 %v1111_v8, %v1853_v51 }
 0xef1   :  { %v1113_v21 = vpop.f32.mrf.mxu0 }
 0xef2   :  { %v1117_v22 = vadd.f32 %v1113_v21, %v1857_v59  ;;  %v1403_v52 = vmul.f32 -1.442695, %v1116_v9 }
 0xef4   :  { %1520 = vtanh.f32 %v1117_v22  ;;  %v1404_v59 = vmul.f32 -1.442695, %v1117_v22 }
 0xef5   :  { %1522 = vpow2.f32 %v1403_v52 }
 0xf01   :  { %v1521_v18 = vpop.eup %1520 }
 0xf02   :  { %1133 = vrot.lane.b32.xlu0 %v1521_v18, %s1593_s2  ;;  %v1523_v60 = vpop.eup %1522 }
 0xf03   :  { %v1124_v42 = vadd.f32 1.0, %v1523_v60 }
 0xf05   :  { %1524 = vrcp.f32 %v1124_v42 }
 0xf12   :  { %v1525_v23 = vpop.eup %1524 }
 0xf13   :  { %v1131_v36 = vmul.f32 %v1525_v23, %v1033_v10 }
 0xf74   :  { %v1134_v32 = vpop.permute.xlu0 %1133 }
 0xf75   :  { %v1136_v17 = vmul.f32 %v1525_v23, %v1134_v32 }
 0xf77   :  { %1138 = vrot.lane.b32.xlu1 %v1136_v17, %s1593_s2 }
 0xfe9   :  { %v1139_v24 = vpop.permute.xlu1 %1138 }
 0xfea   :  { %v1141_v51 = vadd.f32 %v1139_v24, %v1131_v36 }
 0xfec   :  { %1526 = vtanh.f32 %v1141_v51 }
 0xfed   :  { %1528 = vpow2.f32 %v1404_v59 }
 0xff9   :  { %v1527_v19 = vpop.eup %1526 }
 0xffa   :  { %1144 = vrot.lane.b32.xlu0 %v1527_v19, %s1593_s2  ;;  %v1529_v20 = vpop.eup %1528 }
 0xffb   :  { %v1125_v14 = vadd.f32 1.0, %v1529_v20 }
 0xffd   :  { %1530 = vrcp.f32 %v1125_v14 }
0x100a   :  { %v1531_v13 = vpop.eup %1530 }
0x106c   :  { %v1145_v25 = vpop.permute.xlu0 %1144 }
0x106d   :  { %v1147_v26 = vmul.f32 %v1531_v13, %v1145_v25 }
0x106f   :  { %1405 = vmatmul.mubr.msk.f32.vlgmr.msra.gmra.mxu1 %vm125_vm0, %v1147_v26 }
0x112f   :  { %v1219_v16 = vpop.f32.mrf.mxu1 }
0x1130   :  { %v1224_v15 = vadd.f32 %v1219_v16, %v1859_v4  ;;  %v1263_v4 = vld [vmem:[%s2033_s3 + $0x38] sm:$0xff] }
0x1131   :  { %v1221_v27 = vpop.f32.mrf.mxu1  ;;  %1420 = vmatpush3.msra.mxu0 %v1263_v4 }
0x1132   :  { %v1225_v28 = vadd.f32 %v1221_v27, %v1861_v12  ;;  %v1406_v30 = vmul.f32 -1.442695, %v1224_v15  ;;  %v1262_v12 = vld [vmem:[%s2033_s3 + $0x30] sm:$0xff]  ;;  %1421 = vmatprep.subr.mxu0 %v1592_v1  ;;  %s1595_s3 = smov [#allocation5]  }
0x1133   :  { %1422 = vmatpush3.msra.mxu0 %v1262_v12  ;;  %s1352_s11 = sshll.u32 %s1595_s3, 4  ;;  %s1353_s11 = int_to_ptr.vmem [resolvable:$true] %s1352_s11 }
0x1134   :  { %1532 = vtanh.f32 %v1225_v28  ;;  %1423 = vmatprep.subr.mxu0 %v1592_v1  ;;  %v1407_v49 = vmul.f32 -1.442695, %v1225_v28  ;;  %s1564_s12 = scalar_lea.vmem %s1353_s11, 32  ;;  %p1569_p6 = scmp.lt.s32.totalorder %s1353_s11, %s1353_s11 }
0x1135   :  { %1534 = vpow2.f32 %v1406_v30  ;;  %1424 = vmatpush3.msra.mxu0 %v1261_v31  ;;  %p1565_p5 = scmp.ne.s32.totalorder %s1353_s11, %s1564_s12  ;;  %p1570_p7 = scmp.lt.s32.totalorder %s1564_s12, %s1564_s12 }
0x1136   :  { %1425 = vmatprep.subr.mxu0 %v1592_v1 }
0x1137   :  { %1426 = vmatpush3.msra.mxu0 %v1260_v45  ;;  %p1571_p8 = por %p1570_p7, %p1569_p6 }
0x1138   :  { %1427 = vmatprep.subr.mxu0 %v1592_v1 }
0x1139   :  { %1428 = vmatpush3.msra.mxu0 %v1259_v35  ;;  %p1572_p9 = pnand %p1571_p8, %p1565_p5 }
0x113a   :  { %1429 = vmatprep.subr.mxu0 %v1592_v1 }
0x113b   :  { %1430 = vmatpush3.msra.mxu0 %v1258_v41 }
0x113c   :  { %1431 = vmatprep.subr.mxu0 %v1592_v1 }
0x113d   :  { %1432 = vmatpush3.msra.mxu0 %v1257_v43 }
0x113e   :  { %1433 = vmatprep.subr.mxu0 %v1592_v1 }
0x113f   :  { %1434 = vmatpush3.msra.mxu0 %v1256_v46 }
0x1141   :  { %v1533_v29 = vpop.eup %1532 }
0x1142   :  { %1241 = vrot.lane.b32.xlu1 %v1533_v29, %s1593_s2  ;;  %v1535_v33 = vpop.eup %1534 }
0x1143   :  { %v1232_v34 = vadd.f32 1.0, %v1535_v33 }
0x1145   :  { %1536 = vrcp.f32 %v1232_v34 }
0x1152   :  { %v1537_v37 = vpop.eup %1536 }
0x1153   :  { %v1239_v47 = vmul.f32 %v1537_v37, %v1141_v51 }
0x11b4   :  { %v1242_v40 = vpop.permute.xlu1 %1241 }
0x11b5   :  { %v1244_v38 = vmul.f32 %v1537_v37, %v1242_v40 }
0x11b7   :  { %1246 = vrot.lane.b32.xlu0 %v1244_v38, %s1593_s2 }
0x1229   :  { %v1247_v50 = vpop.permute.xlu0 %1246 }
0x122a   :  { %v1249_v55 = vadd.f32 %v1247_v50, %v1239_v47 }
0x122c   :  { %1538 = vtanh.f32 %v1249_v55 }
0x122d   :  { %1540 = vpow2.f32 %v1407_v49 }
0x1239   :  { %v1539_v48 = vpop.eup %1538 }
0x123a   :  { %1252 = vrot.lane.b32.xlu1 %v1539_v48, %s1593_s2  ;;  %v1541_v53 = vpop.eup %1540 }
0x123b   :  { %v1233_v54 = vadd.f32 1.0, %v1541_v53 }
0x123d   :  { %1542 = vrcp.f32 %v1233_v54 }
0x124a   :  { %v1543_v57 = vpop.eup %1542 }
0x12ac   :  { %v1253_v58 = vpop.permute.xlu1 %1252 }
0x12ad   :  { %v1255_v61 = vmul.f32 %v1543_v57, %v1253_v58 }
0x12af   :  { %1436 = vmatmul.mubr.msk.f32.vlgmr.msra.gmra.mxu0 %vm125_vm0, %v1255_v61 }
0x136f   :  { %v1340_v1 = vpop.f32.mrf.mxu0 }
0x1370   :  { %v1341_v2 = vadd.f32 %v1408_v62, %v1340_v1 }
0x1371   :  { %v1437_v3 = vpop.f32.mrf.mxu0 }
0x1372   :  { %1345 = vst.msk [vmem:[#allocation5] sm:$0x3] %vm1344_vm10, %v1341_v2 }
0x1373   :  { %1575 = shalt.err (!%p1572_p9)
}
0x1374   :  { %1355 = dma.vmem_to_hbm [thread:$0]  %s1353_s11, 32, %s2035_s5, [#allocation4]  }
0x1375   :  { %1586 = dma.done.wait [#allocation4], 32  }
0x1376   :  { %1587 = vsyncadd [#allocation4], 4294967264 }
0x1377   :  { %1359 = vsyncpa [#allocation3], 1 }
0x1378   :  { %1360 = vsyncpa [#allocation4], 1 }

</bundles_post_ra>
